<compile_context>
chip_gen: v7x
topology: tpu7x:2x2x1
jax: 0.10.0
libtpu: 0.0.40
codegen_flags: <defaults>
</compile_context>

<pallas_src>
import functools

import jax
import jax.numpy as jnp
from jax.experimental import pallas as pl
from jax.experimental.pallas import tpu as pltpu

_NEG_FILL = -1000000000.0  # same fill value as the PyTorch module


def _lane_pad(n):
    return ((n + 127) // 128) * 128


def _vmem_capacity_bytes():
    """Physical VMEM per TensorCore; fall back to the v7x floor (64 MiB)."""
    try:
        return int(pltpu.get_tpu_info().vmem_capacity_bytes)
    except Exception:
        return 64 << 20


def _is_v5e():
    """Best-effort chip check: v5e has no bf16 VPU/EUP, keep f32 math there."""
    try:
        kind = jax.devices()[0].device_kind.lower()
    except Exception:
        return False
    return ("v5 lite" in kind) or ("v5e" in kind) or ("v5litepod" in kind)


def _pick_block_rows(B, C, in_itemsize, mask_itemsize, vmem_bytes):
    """Batch-tile rows: a multiple of 8, sized against ~VMEM/4 *including* the
    full-width temporaries, and small enough that the grid has >= 4 steps
    (DMA/compute overlap + an even split across v7x's two TensorCores)."""
    cpad = _lane_pad(C)
    per_row = (2 * cpad * in_itemsize      # double-buffered streamed logits
               + cpad * mask_itemsize      # masked full-width temporary
               + 2 * cpad * 4)             # f32 exp-chain / one-hot temporaries
    budget = max(1 << 20, vmem_bytes // 4)
    max_tb = max(8, (budget // per_row) // 8 * 8)
    max_tb = min(max_tb, -(-B // 8) * 8)   # never exceed the (padded) batch

    min_tiles = 4 if B >= 32 else 1

    def score(tb):
        tiles = -(-B // tb)
        return (B % tb == 0,          # avoid a padded HBM copy of the logits
                tiles >= min_tiles,   # keep the pipeline / both TCs busy
                tiles % 2 == 0,       # even split across v7x TensorCores
                tb)                   # then: as large as possible

    return max(range(8, max_tb + 1, 8), key=score)


def _ace_ce_kernel(logits_ref, bias_ref, labels_ref, out_ref, *, total_rows):
    """Per-batch-tile masked cross-entropy, pre-reduced to a tile partial sum.

    logits_ref : (TB, C)   input dtype (f32 or bf16), streamed
    bias_ref   : (1,  C)   additive mask bias {0, -1e9}, resident across grid
    labels_ref : (TB, 1)   int32
    out_ref    : (1, 8, 128) f32, tile loss-sum broadcast (lane-dense store)
    """
    tb, c = logits_ref.shape
    base = pl.program_id(0) * tb

    # Additive mask in the bias dtype: bf16 temporaries on v6e/v7x (half the
    # VMEM/vreg footprint), promoted to f32 on v5e / f32 inputs.  The values
    # flowing through are exact, and all reductions below are f32.
    masked = logits_ref[...] + bias_ref[...]                          # (TB, C)

    m = jnp.max(masked, axis=-1, keepdims=True).astype(jnp.float32)   # (TB, 1)
    p = jnp.exp(masked.astype(jnp.float32) - m)                       # (TB, C)
    sumexp = jnp.sum(p, axis=-1, keepdims=True)                       # (TB, 1)

    class_ids = jax.lax.broadcasted_iota(jnp.int32, (tb, c), 1)       # (TB, C)
    onehot = class_ids == labels_ref[...]
    correct = jnp.sum(jnp.where(onehot, masked.astype(jnp.float32), 0.0),
                      axis=-1, keepdims=True)                         # (TB, 1)

    rowloss = (m + jnp.log(sumexp)) - correct                         # (TB, 1)

    # Zero any padding rows (batch padded up to a multiple of the tile size).
    row_ids = base + jax.lax.broadcasted_iota(jnp.int32, (tb, 1), 0)
    rowloss = jnp.where(row_ids < total_rows, rowloss, 0.0)

    # Pre-reduced, lane-dense output: one unmasked (1, 8, 128) store per tile.
    tile_sum = jnp.sum(rowloss, axis=0, keepdims=True)                # (1, 1)
    out_ref[...] = jnp.broadcast_to(tile_sum.reshape(1, 1, 1),
                                    out_ref.shape).astype(out_ref.dtype)


def ace_ce_loss(logits, labels, *, block_rows=None):
    """ACE masked cross-entropy (seen_so_far empty), mean reduction."""
    B, C = logits.shape
    labels = labels.astype(jnp.int32)
    in_itemsize = jnp.dtype(logits.dtype).itemsize

    # bf16 full-width temporaries on v6e/v7x; f32 on v5e or f32 inputs.
    if logits.dtype == jnp.float32 or _is_v5e():
        mask_dtype = jnp.float32
    else:
        mask_dtype = logits.dtype
    mask_itemsize = jnp.dtype(mask_dtype).itemsize

    # present = labels.unique() membership -> additive bias row, computed once
    # from the (un-padded) labels and kept resident in VMEM across the grid.
    bias = (jnp.full((C,), _NEG_FILL, jnp.float32)
            .at[labels].set(0.0)
            .astype(mask_dtype)
            .reshape(1, C))

    vmem_cap = _vmem_capacity_bytes()
    if block_rows is None:
        tb = _pick_block_rows(B, C, in_itemsize, mask_itemsize, vmem_cap)
    else:
        tb = max(8, ((int(block_rows) + 7) // 8) * 8)   # sublane-aligned
        tb = min(tb, -(-B // 8) * 8)

    # Pad the batch so the tile evenly divides it; padded rows are zeroed
    # inside the kernel via the row-index mask.
    B_pad = -(-B // tb) * tb
    if B_pad != B:
        logits_p = jnp.pad(logits, ((0, B_pad - B), (0, 0)))
        labels_p = jnp.pad(labels, (0, B_pad - B))
    else:
        logits_p, labels_p = logits, labels
    labels2d = labels_p.reshape(B_pad, 1)

    grid_n = B_pad // tb

    # VMEM accounting (blocks + full-width temporaries + headroom), capped per
    # chip generation: 40 MiB on v7x (64 MiB physical), 64 MiB on v5e/v6e.
    cpad = _lane_pad(C)
    est = (2 * tb * cpad * in_itemsize       # double-buffered logits blocks
           + tb * cpad * mask_itemsize       # masked temporary
           + 2 * tb * cpad * 4               # f32 temporaries
           + 4 * 8 * cpad * 4                # resident bias row (+ buffers)
           + 4 * tb * 128 * 4                # labels / misc small blocks
           + 2 * 8 * 128 * 4                 # output block (double-buffered)
           + (4 << 20))                      # headroom
    cap = (40 << 20) if vmem_cap <= (64 << 20) else (64 << 20)
    vmem_limit = int(min(max(est, 32 << 20), cap))

    kernel = functools.partial(_ace_ce_kernel, total_rows=B)

    out = pl.pallas_call(
        kernel,
        out_shape=jax.ShapeDtypeStruct((grid_n, 8, 128), jnp.float32),
        grid_spec=pltpu.PrefetchScalarGridSpec(
            num_scalar_prefetch=0,
            grid=(grid_n,),
            in_specs=[
                pl.BlockSpec((tb, C), lambda i: (i, 0)),   # streamed logits
                pl.BlockSpec((1, C), lambda i: (0, 0)),    # resident bias row
                pl.BlockSpec((tb, 1), lambda i: (i, 0)),   # per-tile labels
            ],
            out_specs=pl.BlockSpec((1, 8, 128), lambda i: (i, 0, 0)),
        ),
        compiler_params=pltpu.CompilerParams(
            dimension_semantics=("parallel",),   # batch tiles split across TCs
            vmem_limit_bytes=vmem_limit,
        ),
        cost_estimate=pl.CostEstimate(
            flops=6 * B_pad * C,
            transcendentals=B_pad * C + B_pad,
            bytes_accessed=(B_pad * C * in_itemsize + C * mask_itemsize
                            + B_pad * 4 + grid_n * 8 * 128 * 4),
        ),
    )(logits_p, bias, labels2d)

    # grid_n partial sums -> mean over the *original* batch size.
    return jnp.sum(out[:, 0, 0]) * (1.0 / B)


def _reference(logits, labels):
    """Pure-JAX reference mirroring the PyTorch module (seen_so_far empty)."""
    logits = logits.astype(jnp.float32)
    C = logits.shape[1]
    present = jnp.zeros((C,), jnp.bool_).at[labels].set(True)
    masked = jnp.where(present[None, :], logits, _NEG_FILL)
    lse = jax.nn.logsumexp(masked, axis=-1)
    correct = jnp.take_along_axis(masked, labels[:, None], axis=-1)[:, 0]
    return jnp.mean(lse - correct)


if __name__ == "__main__":
    key = jax.random.PRNGKey(0)
    k1, k2, k3 = jax.random.split(key, 3)

    B, C = 64, 256
    logits = jax.random.normal(k1, (B, C), dtype=jnp.float32)
    # Labels drawn from a subset of classes so the mask is non-trivial.
    labels = jax.random.randint(k2, (B,), 0, 16, dtype=jnp.int32)

    # f32 path, auto tiling (picks 4 batch tiles -> pipelined, even TC split).
    loss = jax.block_until_ready(ace_ce_loss(logits, labels))
    ref = jax.block_until_ready(_reference(logits, labels))
    assert jnp.allclose(loss, ref, rtol=1e-5, atol=1e-5), (loss, ref)

    # bf16 path: DMA and masked temporaries stay bf16 (f32 on v5e), 8 tiles.
    logits_bf16 = jax.random.normal(k3, (B, C), dtype=jnp.float32).astype(jnp.bfloat16)
    loss_bf = jax.block_until_ready(ace_ce_loss(logits_bf16, labels, block_rows=8))
    ref_bf = jax.block_until_ready(_reference(logits_bf16, labels))
    assert jnp.allclose(loss_bf, ref_bf, rtol=1e-4, atol=1e-4), (loss_bf, ref_bf)

    print("KERNEL_OK")
</pallas_src>

<mosaic_0001>
module attributes {stable_mosaic.version = 11 : i64} {
  func.func @_ace_ce_kernel(%arg0: i32, %arg1: memref<16x256xf32, #tpu.memory_space<vmem>>, %arg2: memref<1x256xf32, #tpu.memory_space<vmem>>, %arg3: memref<16x1xi32, #tpu.memory_space<vmem>>, %arg4: memref<1x8x128xf32, #tpu.memory_space<vmem>>) attributes {dimension_semantics = [#tpu.dimension_semantics<parallel>], iteration_bounds = array<i64: 4>, scalar_prefetch = 0 : i64, scratch_operands = 0 : i64, tpu.core_type = #tpu.core_type<tc>, window_params = [{transform_indices = @transform_0, window_bounds = array<i64: 16, 256>}, {pipeline_mode = #tpu.pipeline_mode<synchronous>, transform_indices = @transform_1, window_bounds = array<i64: 1, 256>}, {transform_indices = @transform_2, window_bounds = array<i64: 16, 1>}, {transform_indices = @transform_3, window_bounds = array<i64: 1, 8, 128>}]} {
    %c16_i32 = arith.constant 16 : i32
    %0 = arith.muli %arg0, %c16_i32 : i32
    %c0 = arith.constant 0 : index
    %c0_0 = arith.constant 0 : index
    %1 = vector.load %arg1[%c0, %c0_0] : memref<16x256xf32, #tpu.memory_space<vmem>>, vector<16x256xf32>
    %c0_1 = arith.constant 0 : index
    %c0_2 = arith.constant 0 : index
    %2 = vector.load %arg2[%c0_1, %c0_2] : memref<1x256xf32, #tpu.memory_space<vmem>>, vector<1x256xf32>
    %3 = vector.broadcast %2 : vector<1x256xf32> to vector<16x256xf32>
    %4 = arith.addf %1, %3 : vector<16x256xf32>
    %cst = arith.constant dense<0xFF800000> : vector<16xf32>
    %5 = vector.multi_reduction <maximumf>, %4, %cst [1] : vector<16x256xf32> to vector<16xf32>
    %6 = vector.shape_cast %5 : vector<16xf32> to vector<16x1xf32>
    %7 = vector.broadcast %6 : vector<16x1xf32> to vector<16x256xf32>
    %8 = arith.subf %4, %7 : vector<16x256xf32>
    %9 = math.exp %8 : vector<16x256xf32>
    %cst_3 = arith.constant dense<0.000000e+00> : vector<16xf32>
    %10 = vector.multi_reduction <add>, %9, %cst_3 [1] : vector<16x256xf32> to vector<16xf32>
    %11 = vector.shape_cast %10 : vector<16xf32> to vector<16x1xf32>
    %12 = tpu.iota {dimensions = array<i32: 1>} : vector<16x256xi32>
    %c0_4 = arith.constant 0 : index
    %c0_5 = arith.constant 0 : index
    %13 = vector.load %arg3[%c0_4, %c0_5] : memref<16x1xi32, #tpu.memory_space<vmem>>, vector<16x1xi32>
    %14 = vector.broadcast %13 : vector<16x1xi32> to vector<16x256xi32>
    %15 = arith.cmpi eq, %12, %14 : vector<16x256xi32>
    %cst_6 = arith.constant 0.000000e+00 : f32
    %16 = vector.broadcast %cst_6 : f32 to vector<16x256xf32>
    %17 = arith.select %15, %4, %16 : vector<16x256xi1>, vector<16x256xf32>
    %cst_7 = arith.constant dense<0.000000e+00> : vector<16xf32>
    %18 = vector.multi_reduction <add>, %17, %cst_7 [1] : vector<16x256xf32> to vector<16xf32>
    %19 = vector.shape_cast %18 : vector<16xf32> to vector<16x1xf32>
    %20 = math.log %11 : vector<16x1xf32>
    %21 = arith.addf %6, %20 : vector<16x1xf32>
    %22 = arith.subf %21, %19 : vector<16x1xf32>
    %23 = tpu.iota {dimensions = array<i32: 0>} : vector<16x1xi32>
    %24 = vector.broadcast %0 : i32 to vector<16x1xi32>
    %25 = arith.addi %24, %23 : vector<16x1xi32>
    %c64_i32 = arith.constant 64 : i32
    %26 = vector.broadcast %c64_i32 : i32 to vector<16x1xi32>
    %27 = arith.cmpi slt, %25, %26 : vector<16x1xi32>
    %cst_8 = arith.constant 0.000000e+00 : f32
    %28 = vector.broadcast %cst_8 : f32 to vector<16x1xf32>
    %29 = arith.select %27, %22, %28 : vector<16x1xi1>, vector<16x1xf32>
    %cst_9 = arith.constant dense<0.000000e+00> : vector<1xf32>
    %30 = vector.multi_reduction <add>, %29, %cst_9 [0] : vector<16x1xf32> to vector<1xf32>
    %31 = vector.shape_cast %30 : vector<1xf32> to vector<1x1xf32>
    %32 = vector.shape_cast %31 : vector<1x1xf32> to vector<1x1x1xf32>
    %33 = vector.shape_cast %32 : vector<1x1x1xf32> to vector<1x1x1xf32>
    %34 = vector.broadcast %33 : vector<1x1x1xf32> to vector<1x8x128xf32>
    %c0_10 = arith.constant 0 : index
    %c0_11 = arith.constant 0 : index
    %c0_12 = arith.constant 0 : index
    %35 = vector.load %arg4[%c0_10, %c0_11, %c0_12] : memref<1x8x128xf32, #tpu.memory_space<vmem>>, vector<1x8x128xf32>
    tpu.vector_store %arg4[%c0_10, %c0_11, %c0_12], %34 {strides = array<i32>} : memref<1x8x128xf32, #tpu.memory_space<vmem>>, vector<1x8x128xf32>,
    return
  }
  func.func @transform_0(%arg0: i32) -> (i32, i32) {
    %c0_i32 = arith.constant 0 : i32
    %c0_i32_0 = arith.constant 0 : i32
    return %arg0, %c0_i32 : i32, i32
  }
  func.func @transform_1(%arg0: i32) -> (i32, i32) {
    %c0_i32 = arith.constant 0 : i32
    %c0_i32_0 = arith.constant 0 : i32
    %c0_i32_1 = arith.constant 0 : i32
    return %c0_i32, %c0_i32_0 : i32, i32
  }
  func.func @transform_2(%arg0: i32) -> (i32, i32) {
    %c0_i32 = arith.constant 0 : i32
    %c0_i32_0 = arith.constant 0 : i32
    return %arg0, %c0_i32 : i32, i32
  }
  func.func @transform_3(%arg0: i32) -> (i32, i32, i32) {
    %c0_i32 = arith.constant 0 : i32
    %c0_i32_0 = arith.constant 0 : i32
    %c0_i32_1 = arith.constant 0 : i32
    return %arg0, %c0_i32, %c0_i32_0 : i32, i32, i32
  }
}

</mosaic_0001>

<bundles_post_ra>
// kernel: tpu_custom_call.1
= control target key start
LH: loop header
LB: loop body
LE: loop exit
PB: predicated region body
PF: predicated region fallthrough
CT: control target
= control target key end

     0   :  { %8 = vsyncpa [#allocation3], 0  ;;  %s783_s0 = inlined_call_operand.hbm [shape: f32[64,256], index: 0, kind: input, shape index: {}]   ;;  %s784_s1 = inlined_call_operand.vmem [shape: f32[1,256], index: 1, kind: input, shape index: {}]   ;;  %s785_s2 = inlined_call_operand.vmem [shape: s32[64,1], index: 2, kind: input, shape index: {}]   ;;  %s786_s3 = inlined_call_operand.hbm [shape: f32[4,8,128], index: 3, kind: output, shape index: {}]  }
   0x1   :  { %10 = vsyncpa [#allocation3 + $0x1], 0 }
   0x2   :  { %11 = vsyncpa [#allocation4], 0 }
   0x3   :  { %13 = vsyncpa [#allocation4 + $0x1], 0  ;;  %s610_s12 = smov 0   ;;  %s612_s13 = smov 0  }
   0x4   :  { %s614_s14 = smov 0   ;;  %s616_s15 = smov 0  }
   0x5 LB: > { %s631_s16 = sadd.s32 4294967295, %s583_s15   ;;  %s405_s17 = sadd.s32 4294967294, %s583_s15   ;;  %s583_s15 = sphi %s616_s15, %s798_s15   ;;  %s579_s14 = sphi %s614_s14, %s797_s14   ;;  %s575_s13 = sphi %s612_s13, %s796_s13   ;;  %s571_s12 = sphi %s610_s12, %s795_s12  }
   0x6   : > { %s635_s18 = sadd.s32 1, %s583_s15   ;;  %s26_s19 = sadd.s32 1, %s579_s14 }
   0x7   : > { %s23_s20 = ssub.s32 %s583_s15, %s635_s18  ;;  %p33_p0 = scmp.ne.s32.totalorder %s579_s14, %s575_s13 }
   0x8   : > { %p24_p1 = scmp.eq.s32.totalorder %s23_s20, 0  ;;  %p34_p2 = scmp.eq.s32.totalorder %s583_s15, 0 }
   0x9   : > { %p39_p3 = scmp.ne.s32.totalorder %s575_s13, %s571_s12  ;;  %p40_p4 = scmp.eq.s32.totalorder %s631_s16, 0 }
   0xa   : > { %s647_s21 = scalar_select %p24_p1, %s579_s14, %s26_s19  }
   0xb   : > { %p649_p5 = por %p34_p2, %p33_p0  ;;  %p653_p6 = por %p40_p4, %p39_p3 }
   0xc   : > { %p110_p7 = scmp.eq.s32.totalorder %s631_s16, 3  ;;  %p116_p8 = scmp.eq.s32.totalorder %s405_s17, 3 }
   0xd   : > { %p436_p9 = scmp.lt.s32.totalorder %s583_s15, 4  ;;  %s139_s26 = sand.u32 1, %s579_s14  }
   0xe   : > { %p659_p10 = por %p110_p7, %p33_p0  ;;  %p663_p11 = por %p116_p8, %p39_p3 }
   0xf   : > { %s423_s27 = sshll.u32 %s583_s15, 9  ;;  %s408_s28 = sshll.u32 %s139_s26, 5 }
  0x10   : > { %s790_s24 = scalar_select %p659_p10, 1, 0 }
  0x11   : > { %s791_s25 = scalar_select %p663_p11, 1, 0 }
  0x12   : > { %s672_s4 = scalar_lea.hbm %s783_s0, %s423_s27  ;;  %s143_s5 = scalar_lea.vmem [#allocation2], %s408_s28 }
  0x13   : > { %s151_s6 = sshll.u32 %s143_s5, 4  ;;  %p676_p12 = pnand %p436_p9, %p649_p5  ;;  %s680_s6 = int_to_ptr.vmem [resolvable:$true] %s151_s6 }
  0x14   : > { %s682_s8 = scalar_lea.sflag [#allocation3], %s139_s26  ;;  %s487_s9 = scalar_lea.hbm %s672_s4, 512 }
  0x15   : > { %p488_p13 = scmp.ne.s32.totalorder %s672_s4, %s487_s9  ;;  %p489_p0 = pneg %p676_p12 }
  0x16   : > { %s492_s17 = scalar_lea.hbm %s783_s0, 2048  ;;  %p493_p3 = scmp.lt.u32.totalorder %s672_s4, %s783_s0 }
  0x17   : > { %p490_p1 = pnand %p489_p0, %p488_p13  ;;  %p494_p4 = scmp.lt.u32.totalorder %s492_s17, %s487_s9 }
  0x18   : > { %p496_p7 = scmp.lt.u32.totalorder %s487_s9, %s672_s4 }
  0x19   : > { %p491_p2 = pneg %p490_p1  ;;  %p495_p5 = por %p494_p4, %p493_p3 }
  0x1b   : > { %p497_p8 = por %p496_p7, %p495_p5 }
  0x1d   : > { %p498_p9 = pnand %p497_p8, %p491_p2 }
  0x1f   : > { %501 = shalt.err (!%p498_p9)
}
  0x20   : > { %s502_s22 = scalar_lea.vmem %s680_s6, 512  ;;  %s585_s26 = smov [#allocation2]  }
  0x21   : > { %p503_p13 = scmp.ne.s32.totalorder %s680_s6, %s502_s22  ;;  %s507_s27 = sshll.u32 %s585_s26, 4  ;;  %s508_s27 = int_to_ptr.vmem [resolvable:$false] %s507_s27 }
  0x22   : > { %s509_s28 = scalar_lea.vmem %s508_s27, 1024  ;;  %p510_p10 = scmp.lt.s32.totalorder %s680_s6, %s508_s27 }
  0x23   : > { %p505_p1 = pnand %p503_p13, %p489_p0  ;;  %p511_p3 = scmp.lt.s32.totalorder %s509_s28, %s502_s22 }
  0x25   : > { %p506_p11 = pneg %p505_p1  ;;  %p512_p4 = por %p511_p3, %p510_p10 }
  0x27   : > { %p513_p5 = pnand %p512_p4, %p506_p11 }
  0x29   : > { %516 = shalt.err (!%p513_p5)
}
  0x2a   : > { %s586_s29 = smov 256   ;;  %s587_s30 = smov 16  }
  0x2b   : > { %431 = dma.hbm_to_vmem [thread:$0]  (!%p676_p12), %s672_s4, 512, %s680_s6, %s682_s8, %s586_s29, %s586_s29, %s587_s30  }
  0x2c   : > { %p412_p0 = scmp.ge.s32.totalorder %s583_s15, 1  ;;  %p168_p2 = scmp.lt.s32.totalorder %s583_s15, 5 }
  0x2e   : > { %p169_p7 = pnand %p412_p0, %p168_p2 }
  0x2f   : > { %s713_s5 = sand.u32 (!%p169_p7), 1, %s575_s13  }
  0x30   : > { %172 = sbr.rel (%p169_p7) target bundleno = 420 (0x1a4), region = 32  ;;  %s413_s9 = sshll.u32 (!%p169_p7), %s713_s5, 5 }
  0x31   : > { %s175_s10 = scalar_lea.sflag (!%p169_p7), [#allocation3], %s713_s5  ;;  %s178_s11 = scalar_lea.vmem (!%p169_p7), [#allocation2], %s413_s9 }
  0x37   : > { %562 = dma.done.wait (%p653_p6), %s175_s10, 512  }
  0x38   : > { %564 = vsyncadd (%p653_p6), %s175_s10, 4294966784  ;;  %v220_v0 = vlaneseq  ;;  %s415_s4 = sshll.u32 %s631_s16, 1  ;;  %v588_v1 = vmov 0   ;;  %v214_v5 = vld [vmem:[%s178_s11] sm:$0xff]  ;;  %v215_v6 = vld [vmem:[%s178_s11 + $0x8] sm:$0xff]  ;;  %s417_s20 = sshll.u32 %s631_s16, 4 }
  0x39   : > { %473 = vset.pattern.permute.xlu1 %v588_v1  ;;  %p208_p10 = scmp.lt.s32.totalorder %s415_s4, 7  ;;  %474 = vset.pattern.permute.xlu0 %v588_v1  ;;  %v218_v7 = vld [vmem:[%s784_s1] sm:$0x3]  ;;  %v216_v10 = vld [vmem:[%s178_s11 + $0x10] sm:$0xff]  ;;  %v217_v11 = vld [vmem:[%s178_s11 + $0x18] sm:$0xff]  ;;  %v294_v51 = vstv %s417_s20  ;;  %s414_s22 = sshll.u32 %s713_s5, 3 }
  0x3a   : > { %v722_v2 = vshrl.u32 %v220_v0, 7  ;;  %v259_v28 = vand.u32 127, %v220_v0  ;;  %s419_s26 = sshll.u32 %s631_s16, 7  ;;  %s205_s27 = scalar_lea.vmem [#allocation5], %s414_s22 }
  0x3b   : > { %s800_s4 = smov (!%p208_p10, %s415_s4), 7  ;;  %s323_s28 = sshll.u32 %s205_s27, 4  ;;  %s742_s28 = int_to_ptr.vmem [resolvable:$true] %s323_s28 }
  0x3c   : > { %v222_v3 = vsub.s32 0, %v722_v2  ;;  %v226_v4 = vsub.s32 1, %v722_v2  ;;  %s416_s6 = sshll.u32 %s800_s4, 3  ;;  %v260_v32 = vadd.s32 128, %v259_v28  ;;  %v293_v49 = vadd.s32 8, %v722_v2  ;;  %s740_s9 = scalar_lea.hbm %s786_s3, %s419_s26 }
  0x3d   : > { %s211_s23 = scalar_lea.vmem %s785_s2, %s416_s6  ;;  %v295_v55 = vadd.s32 %v294_v51, %v722_v2  ;;  %s310_s10 = scalar_lea.sflag [#allocation4], %s713_s5 }
  0x3e   : > { %v223_v8 = vrot.slane %v218_v7, %v222_v3  ;;  %v227_v9 = vrot.slane %v218_v7, %v226_v4  ;;  %v261_v12 = vld [vmem:[%s211_s23] sm:$0xff]  ;;  %v262_v17 = vld [vmem:[%s211_s23 + $0x8] sm:$0xff]  ;;  %v296_v56 = vadd.s32 %v294_v51, %v293_v49  ;;  %s517_s11 = scalar_lea.vmem %s742_s28, 128  ;;  %p793_p11 = scmp.ne.s32.totalorder %s790_s24, 0 }
  0x3f   : > { %264 = vperm.xlu1 %473, %v261_v12   ;;  %vm297_vm4 = vcmp.lt.s32.totalorder %v295_v55, 64  ;;  %p518_p6 = scmp.ne.s32.totalorder %s742_s28, %s517_s11  ;;  %s589_s16 = smov [#allocation5]  }
  0x40   : > { %v230_v13 = vadd.f32 %v223_v8, %v214_v5  ;;  %v231_v14 = vadd.f32 %v227_v9, %v215_v6  ;;  %v232_v15 = vadd.f32 %v223_v8, %v216_v10  ;;  %v233_v16 = vadd.f32 %v227_v9, %v217_v11  ;;  %s521_s4 = sshll.u32 %s589_s16, 4  ;;  %s522_s4 = int_to_ptr.vmem [resolvable:$false] %s521_s4 }
  0x41   : > { %vm298_vm5 = vcmp.lt.s32.totalorder %v296_v56, 64  ;;  %p519_p12 = pnand %p518_p6, %p793_p11  ;;  %s523_s6 = scalar_lea.vmem %s522_s4, 256 }
  0x42   : > { %v234_v18 = vmax.f32 %v230_v13, %v231_v14  ;;  %v237_v19 = vmax.f32 %v232_v15, %v233_v16  ;;  %p524_p9 = scmp.lt.s32.totalorder %s742_s28, %s522_s4  ;;  %p525_p13 = scmp.lt.s32.totalorder %s523_s6, %s517_s11 }
  0x43   : > { %267 = vperm.xlu1 %473, %v262_v17   ;;  %p520_p8 = pneg %p519_p12 }
  0x44   : > { %235 = vmax.xlane.f32.xlu0 %v234_v18  ;;  %p526_p1 = por %p525_p13, %p524_p9 }
  0x46   : > { %p527_p3 = pnand %p526_p1, %p520_p8 }
  0x48   : > { %238 = vmax.xlane.f32.xlu0 %v237_v19 }
  0xbe   : > { %v265_v31 = vpop.permute.xlu1 %264 }
  0xbf   : > { %vm269_vm0 = vcmp.eq.s32.totalorder %v259_v28, %v265_v31  ;;  %vm270_vm1 = vcmp.eq.s32.totalorder %v260_v32, %v265_v31 }
  0xc0   : > { %v273_v36 = vsel %vm269_vm0, %v230_v13, 0.0  ;;  %v274_v37 = vsel %vm270_vm1, %v231_v14, 0.0 }
  0xc1   : > { %v277_v40 = vadd.f32 %v274_v37, %v273_v36 }
  0xc2   : > { %v268_v33 = vpop.permute.xlu1 %267 }
  0xc3   : > { %vm271_vm2 = vcmp.eq.s32.totalorder %v259_v28, %v268_v33  ;;  %vm272_vm3 = vcmp.eq.s32.totalorder %v260_v32, %v268_v33 }
  0xc4   : > { %v275_v42 = vsel %vm271_vm2, %v232_v15, 0.0  ;;  %v276_v43 = vsel %vm272_vm3, %v233_v16, 0.0 }
  0xc5   : > { %v280_v45 = vadd.f32 %v276_v43, %v275_v42 }
  0xd1   : > { %v236_v20 = vpop.xlane.xlu0 %235 }
  0xd2   : > { %v240_v21 = vsub.f32 %v230_v13, %v236_v20  ;;  %v241_v22 = vsub.f32 %v231_v14, %v236_v20 }
  0xd4   : > { %v244_v23 = vmul.f32 1.442695, %v240_v21  ;;  %v246_v24 = vmul.f32 1.442695, %v241_v22 }
  0xd5   : > { %v239_v25 = vpop.xlane.xlu0 %238 }
  0xd6   : > { %475 = vpow2.f32 %v244_v23  ;;  %v242_v26 = vsub.f32 %v232_v15, %v239_v25  ;;  %v243_v27 = vsub.f32 %v233_v16, %v239_v25 }
  0xd7   : > { %477 = vpow2.f32 %v246_v24 }
  0xd8   : > { %v248_v29 = vmul.f32 1.442695, %v242_v26  ;;  %v250_v30 = vmul.f32 1.442695, %v243_v27 }
  0xda   : > { %479 = vpow2.f32 %v248_v29 }
  0xdb   : > { %481 = vpow2.f32 %v250_v30 }
  0xe0   : > { %v476_v34 = vpop.eup %475 }
  0xe1   : > { %v478_v35 = vpop.eup %477 }
  0xe2   : > { %v252_v38 = vadd.f32 %v478_v35, %v476_v34 }
  0xe4   : > { %v480_v39 = vpop.eup %479  ;;  %253 = vadd.xlane.f32.xlu0 %v252_v38 }
  0xe5   : > { %v482_v41 = vpop.eup %481 }
  0xe6   : > { %v255_v44 = vadd.f32 %v482_v41, %v480_v39 }
  0xe8   : > { %256 = vadd.xlane.f32.xlu1 %v255_v44  ;;  %278 = vadd.xlane.f32.xlu0 %v277_v40 }
  0xec   : > { %281 = vadd.xlane.f32.xlu0 %v280_v45 }
 0x171   : > { %v254_v46 = vpop.xlane.xlu0 %253 }
 0x172   : > { %483 = vlog2.f32 %v254_v46 }
 0x175   : > { %v257_v47 = vpop.xlane.xlu1 %256  ;;  %v279_v52 = vpop.xlane.xlu0 %278 }
 0x176   : > { %485 = vlog2.f32 %v257_v47 }
 0x179   : > { %v282_v60 = vpop.xlane.xlu0 %281 }
 0x17c   : > { %v484_v48 = vpop.eup %483 }
 0x17d   : > { %v284_v50 = vmul.f32 0.6931472, %v484_v48 }
 0x17f   : > { %v287_v53 = vadd.f32 %v284_v50, %v236_v20 }
 0x180   : > { %v486_v54 = vpop.eup %485 }
 0x181   : > { %v286_v57 = vmul.f32 0.6931472, %v486_v54  ;;  %v289_v58 = vsub.f32 %v287_v53, %v279_v52 }
 0x183   : > { %v288_v59 = vadd.f32 %v286_v57, %v239_v25  ;;  %v299_v62 = vsel %vm297_vm4, %v289_v58, 0.0 }
 0x185   : > { %v290_v61 = vsub.f32 %v288_v59, %v282_v60 }
 0x187   : > { %v300_v63 = vsel %vm298_vm5, %v290_v61, 0.0 }
 0x188   : > { %v301_v0 = vadd.f32 %v300_v63, %v299_v62 }
 0x18a   : > { %v302_v1 = vrot.slane %v301_v0, 4 }
 0x18c   : > { %v303_v3 = vadd.f32 %v302_v1, %v301_v0 }
 0x18e   : > { %v304_v4 = vrot.slane %v303_v3, 2 }
 0x190   : > { %v305_v5 = vadd.f32 %v304_v4, %v303_v3 }
 0x192   : > { %v306_v2 = vrot.slane %v305_v5, 1 }
 0x194   : > { %v307_v6 = vadd.f32 %v306_v2, %v305_v5 }
 0x196   : > { %308 = vst [vmem:[%s205_s27] sm:$0xff] %v307_v6 }
 0x197   : > { %530 = shalt.err (!%p527_p3)
}
 0x198   : > { %s531_s5 = scalar_lea.hbm %s740_s9, 128  ;;  %s535_s23 = scalar_lea.hbm %s786_s3, 512 }
 0x199   : > { %p532_p4 = scmp.ne.s32.totalorder %s740_s9, %s531_s5  ;;  %p536_p2 = scmp.lt.u32.totalorder %s740_s9, %s786_s3 }
 0x19a   : > { %p537_p7 = scmp.lt.u32.totalorder %s535_s23, %s531_s5  ;;  %p539_p6 = scmp.lt.u32.totalorder %s531_s5, %s740_s9 }
 0x19b   : > { %p533_p5 = pnand %p532_p4, %p793_p11 }
 0x19c   : > { %p538_p10 = por %p537_p7, %p536_p2 }
 0x19d   : > { %p534_p0 = pneg %p533_p5 }
 0x19e   : > { %p540_p12 = por %p539_p6, %p538_p10 }
 0x1a0   : > { %p541_p8 = pnand %p540_p12, %p534_p0 }
 0x1a2   : > { %544 = shalt.err (!%p541_p8)
}
 0x1a3   : > { %426 = dma.vmem_to_hbm [thread:$0]  (%p793_p11), %s742_s28, 128, %s740_s9, %s310_s10  }
 0x1a4 PF: > { %p437_p9 = scmp.ge.s32.totalorder %s583_s15, 2  ;;  %s335_s20 = sand.u32 1, %s571_s12  }
 0x1a5   : > { %p794_p13 = scmp.ne.s32.totalorder %s791_s25, 0  ;;  %s336_s22 = scalar_lea.sflag [#allocation4], %s335_s20 }
 0x1a7   : > { %p433_p1 = pnand %p437_p9, %p794_p13 }
 0x1a9   : > { %566 = dma.done.wait (!%p433_p1), %s336_s22, 128  }
 0x1aa   : > { %568 = vsyncadd (!%p433_p1), %s336_s22, 4294967168  ;;  %p16_p3 = scmp.ge.s32.totalorder %s635_s18, 6   ;;  %s795_s12 = smov %s575_s13 }
 0x1ab   : > { %s796_s13 = smov %s579_s14  ;;  %s797_s14 = smov %s647_s21 }
 0x1ac   : > { %s798_s15 = smov %s635_s18  ;;  %18 = sbr.rel (!%p16_p3) target bundleno = 5 (0x5), region = 80 }
 0x1b3   :  { %341 = vsyncpa [#allocation3], 1 }
 0x1b4   :  { %343 = vsyncpa [#allocation3 + $0x1], 1 }
 0x1b5   :  { %344 = vsyncpa [#allocation4], 1 }
 0x1b6   :  { %346 = vsyncpa [#allocation4 + $0x1], 1 }

</bundles_post_ra>
